<compile_context>
chip_gen: v6e
topology: v6e:2x2x1
jax: 0.10.0
libtpu: 0.0.40
codegen_flags: <defaults>
</compile_context>

<pallas_src>
import jax
import jax.numpy as jnp
from jax.experimental import pallas as pl
from jax.experimental.pallas import tpu as pltpu


H_PAD = 128  # lane-dense padded hidden width


def _round_up(v, m):
    return ((v + m - 1) // m) * m


def classifier_kernel(x_ref, w1_ref, wh_ref, b_ref, o_ref):
    """Fused MLP forward for one batch tile.

    x_ref : (Bb, x_in)   activation tile (f32)
    w1_ref: (x_in, Hp)   layer-1 weight, cols zero-padded H -> Hp (f32)
    wh_ref: (3, Hp, Hp)  layers 2..4 weights (bf16, zero padded)
    b_ref : (6, 1, Hp)   rows 0..3: biases of layers 1..4 (zero padded),
                         row 4: w5[:,1]-w5[:,0] (zero padded),
                         row 5: b5[1]-b5[0] in lane 0, zeros elsewhere
    o_ref : (Bb, 2)      softmax probabilities (f32)
    """
    x_in = x_ref.shape[1]

    # Layer 1 on the VPU: K = x_in is tiny, so broadcast mul-adds beat a
    # degenerate K=2 MXU matmul (same MXU pushes as K=128, 1/64th the work).
    if x_in <= 8:
        h = x_ref[:, 0:1] * w1_ref[0:1, :]
        for k in range(1, x_in):
            h = h + x_ref[:, k:k + 1] * w1_ref[k:k + 1, :]
    else:
        h = jnp.dot(x_ref[...], w1_ref[...], preferred_element_type=jnp.float32)
    h = jnp.maximum(h + b_ref[0], 0.0)

    # Layers 2..4: bf16 MXU matmuls with f32 accumulation; bias/ReLU in f32.
    # Zero padding of rows/cols H..Hp-1 keeps padded lanes exactly zero.
    for i in range(3):
        h = jnp.dot(h.astype(jnp.bfloat16), wh_ref[i],
                    preferred_element_type=jnp.float32)
        h = jnp.maximum(h + b_ref[i + 1], 0.0)

    # Layer 5 (H -> 2) folded into the 2-class softmax-as-sigmoid:
    #   d  = h @ (w5[:,1]-w5[:,0]) + (b5[1]-b5[0])   (VPU mul + XLU lane reduce)
    #   p1 = sigmoid(d) = e^{l1}/(e^{l0}+e^{l1})
    d = jnp.sum(h * b_ref[4] + b_ref[5], axis=-1, keepdims=True)   # (Bb, 1)
    p1 = 1.0 / (1.0 + jnp.exp(-d))                                 # EUP exp

    bb = o_ref.shape[0]
    lane = jax.lax.broadcasted_iota(jnp.int32, (bb, 2), 1)
    o_ref[...] = jnp.where(lane == 0, 1.0 - p1, p1)


def classifier_forward(x, packed_params, *, block_b=2048):
    """x: (B, x_in) f32; packed_params = (w1 (x_in,Hp), wh (3,Hp,Hp) bf16, bx (6,1,Hp))."""
    w1, wh, bx = packed_params
    B, x_in = x.shape
    Hp = w1.shape[1]

    # Batch tile: large (amortizes ~0.35 us/grid-step overhead, feeds the MXU
    # with many LHS rows per resident weight load) and, when the batch would
    # otherwise fit a single block, split into two 8-aligned halves so the
    # "parallel" batch axis shards across v7x's two TensorCores. VMEM footprint
    # at 2048 rows is <3 MiB, far under every chip's capacity.
    tile_b = min(block_b, _round_up(pl.cdiv(B, 2), 8))
    tile_b = max(8, tile_b)
    n_blocks = pl.cdiv(B, tile_b)
    Bp = n_blocks * tile_b
    if Bp != B:
        x = jnp.pad(x, ((0, Bp - B), (0, 0)))

    flops = 2 * Bp * (x_in * Hp + 3 * Hp * Hp + Hp)
    bytes_accessed = (4 * x.size + 4 * w1.size + 2 * wh.size + 4 * bx.size
                      + 4 * Bp * 2)

    out = pl.pallas_call(
        classifier_kernel,
        out_shape=jax.ShapeDtypeStruct((Bp, 2), jnp.float32),
        grid_spec=pltpu.PrefetchScalarGridSpec(
            num_scalar_prefetch=0,
            grid=(n_blocks,),
            in_specs=[
                pl.BlockSpec((tile_b, x_in), lambda i: (i, 0)),   # activations (tiled)
                pl.BlockSpec((x_in, Hp), lambda i: (0, 0)),       # layer-1 weight resident
                pl.BlockSpec((3, Hp, Hp), lambda i: (0, 0, 0)),   # hidden weights resident
                pl.BlockSpec((6, 1, Hp), lambda i: (0, 0, 0)),    # biases / folded layer 5
            ],
            out_specs=pl.BlockSpec((tile_b, 2), lambda i: (i, 0)),
        ),
        compiler_params=pltpu.CompilerParams(
            dimension_semantics=("parallel",),
            vmem_limit_bytes=32 * 1024 * 1024,   # v5e default is only 16 MiB
        ),
        cost_estimate=pl.CostEstimate(
            flops=flops, transcendentals=Bp, bytes_accessed=bytes_accessed),
    )(x, w1, wh, bx)

    return out if Bp == B else out[:B]


def init_params(key, x_in, H):
    """PyTorch Linear default init: uniform(-1/sqrt(fan_in), 1/sqrt(fan_in))."""
    dims = [(x_in, H), (H, H), (H, H), (H, H), (H, 2)]
    params = []
    for d_in, d_out in dims:
        key, kw, kb = jax.random.split(key, 3)
        bound = 1.0 / float(d_in) ** 0.5
        w = jax.random.uniform(kw, (d_in, d_out), jnp.float32, -bound, bound)
        bvec = jax.random.uniform(kb, (d_out,), jnp.float32, -bound, bound)
        params.append((w, bvec))
    return params


def pack_params(params, h_pad=H_PAD):
    """Zero-pad H -> h_pad and pack 11 tensors into 3 contiguous operands."""
    w1, _ = params[0]
    x_in, H = w1.shape
    w1p = jnp.zeros((x_in, h_pad), jnp.float32).at[:, :H].set(w1)

    # Layers 2..4 weights, bf16 for native MXU rate (f32 accumulation in-kernel).
    wh = jnp.zeros((3, h_pad, h_pad), jnp.float32)
    for i in range(1, 4):
        w, _ = params[i]
        wh = wh.at[i - 1, :H, :H].set(w)
    wh = wh.astype(jnp.bfloat16)

    # Biases (layers 1..4) + folded layer-5 difference weight/bias, all f32.
    w5, b5 = params[4]
    bx = jnp.zeros((6, 1, h_pad), jnp.float32)
    for i in range(4):
        _, bvec = params[i]
        bx = bx.at[i, 0, :bvec.shape[0]].set(bvec)
    bx = bx.at[4, 0, :H].set(w5[:, 1] - w5[:, 0])   # w_diff
    bx = bx.at[5, 0, 0].set(b5[1] - b5[0])          # b_diff (lane 0 only)
    return w1p, wh, bx


def reference_forward(x, params):
    """Pure f32 reference matching the PyTorch module."""
    h = x
    for i, (w, bvec) in enumerate(params):
        h = h @ w + bvec
        if i < len(params) - 1:
            h = jnp.maximum(h, 0.0)
    return jax.nn.softmax(h, axis=-1)


if __name__ == "__main__":
    x_in, H = 2, 50
    key = jax.random.PRNGKey(0)
    key, kx, kx2 = jax.random.split(key, 3)

    params = init_params(key, x_in, H)
    packed = pack_params(params)

    # Small batch (single grid block).
    B = 8
    x = jax.random.normal(kx, (B, x_in), jnp.float32)
    out = jax.block_until_ready(classifier_forward(x, packed))
    ref = reference_forward(x, params)
    assert out.shape == (B, 2)
    assert jnp.allclose(out, ref, atol=2e-2, rtol=0.0), "mismatch vs f32 reference"
    assert jnp.allclose(jnp.sum(out, axis=-1), 1.0, atol=1e-5), "rows must sum to 1"

    # Larger, non-aligned batch: exercises the tiled grid + padding path.
    B2 = 2500
    x2 = jax.random.normal(kx2, (B2, x_in), jnp.float32)
    out2 = jax.block_until_ready(classifier_forward(x2, packed))
    ref2 = reference_forward(x2, params)
    assert out2.shape == (B2, 2)
    assert jnp.allclose(out2, ref2, atol=2e-2, rtol=0.0), "mismatch (tiled path)"
    assert jnp.allclose(jnp.sum(out2, axis=-1), 1.0, atol=1e-5), "rows must sum to 1"

    print("KERNEL_OK")
</pallas_src>

<mosaic_0001>
module attributes {stable_mosaic.version = 11 : i64} {
  func.func @classifier_kernel(%arg0: i32, %arg1: memref<8x2xf32, #tpu.memory_space<vmem>>, %arg2: memref<2x128xf32, #tpu.memory_space<vmem>>, %arg3: memref<3x128x128xbf16, #tpu.memory_space<vmem>>, %arg4: memref<6x1x128xf32, #tpu.memory_space<vmem>>, %arg5: memref<8x2xf32, #tpu.memory_space<vmem>>) attributes {dimension_semantics = [#tpu.dimension_semantics<parallel>], iteration_bounds = array<i64: 1>, scalar_prefetch = 0 : i64, scratch_operands = 0 : i64, tpu.core_type = #tpu.core_type<tc>, window_params = [{transform_indices = @transform_0, window_bounds = array<i64: 8, 2>}, {pipeline_mode = #tpu.pipeline_mode<synchronous>, transform_indices = @transform_1, window_bounds = array<i64: 2, 128>}, {pipeline_mode = #tpu.pipeline_mode<synchronous>, transform_indices = @transform_2, window_bounds = array<i64: 3, 128, 128>}, {pipeline_mode = #tpu.pipeline_mode<synchronous>, transform_indices = @transform_3, window_bounds = array<i64: 6, 1, 128>}, {transform_indices = @transform_4, window_bounds = array<i64: 8, 2>}]} {
    %c0 = arith.constant 0 : index
    %c0_0 = arith.constant 0 : index
    %0 = vector.load %arg1[%c0, %c0_0] : memref<8x2xf32, #tpu.memory_space<vmem>>, vector<8x1xf32>
    %c0_1 = arith.constant 0 : index
    %c0_2 = arith.constant 0 : index
    %1 = vector.load %arg2[%c0_1, %c0_2] : memref<2x128xf32, #tpu.memory_space<vmem>>, vector<1x128xf32>
    %2 = vector.broadcast %0 : vector<8x1xf32> to vector<8x128xf32>
    %3 = vector.broadcast %1 : vector<1x128xf32> to vector<8x128xf32>
    %4 = arith.mulf %2, %3 : vector<8x128xf32>
    %c0_3 = arith.constant 0 : index
    %c1 = arith.constant 1 : index
    %5 = vector.load %arg1[%c0_3, %c1] : memref<8x2xf32, #tpu.memory_space<vmem>>, vector<8x1xf32>
    %c1_4 = arith.constant 1 : index
    %c0_5 = arith.constant 0 : index
    %6 = vector.load %arg2[%c1_4, %c0_5] : memref<2x128xf32, #tpu.memory_space<vmem>>, vector<1x128xf32>
    %7 = vector.broadcast %5 : vector<8x1xf32> to vector<8x128xf32>
    %8 = vector.broadcast %6 : vector<1x128xf32> to vector<8x128xf32>
    %9 = arith.mulf %7, %8 : vector<8x128xf32>
    %10 = arith.addf %4, %9 : vector<8x128xf32>
    %c0_6 = arith.constant 0 : index
    %c0_7 = arith.constant 0 : index
    %c0_8 = arith.constant 0 : index
    %11 = vector.load %arg4[%c0_6, %c0_7, %c0_8] : memref<6x1x128xf32, #tpu.memory_space<vmem>>, vector<1x1x128xf32>
    %12 = vector.shape_cast %11 : vector<1x1x128xf32> to vector<1x128xf32>
    %13 = vector.broadcast %12 : vector<1x128xf32> to vector<8x128xf32>
    %14 = arith.addf %10, %13 : vector<8x128xf32>
    %cst = arith.constant 0.000000e+00 : f32
    %15 = vector.broadcast %cst : f32 to vector<8x128xf32>
    %16 = arith.maximumf %14, %15 : vector<8x128xf32>
    %17 = arith.truncf %16 : vector<8x128xf32> to vector<8x128xbf16>
    %c0_9 = arith.constant 0 : index
    %c0_10 = arith.constant 0 : index
    %c0_11 = arith.constant 0 : index
    %18 = vector.load %arg3[%c0_9, %c0_10, %c0_11] : memref<3x128x128xbf16, #tpu.memory_space<vmem>>, vector<1x128x128xbf16>
    %19 = vector.shape_cast %18 : vector<1x128x128xbf16> to vector<128x128xbf16>
    %cst_12 = arith.constant dense<0.000000e+00> : vector<8x128xf32>
    %20 = tpu.matmul %17, %19, %cst_12 {dimension_numbers = #tpu.dot_dimension_numbers<[1], [0], [0], [1], [0, 0, 1, 1], [], []>} : vector<8x128xbf16>, vector<128x128xbf16>, vector<8x128xf32> -> vector<8x128xf32>
    %c1_13 = arith.constant 1 : index
    %c0_14 = arith.constant 0 : index
    %c0_15 = arith.constant 0 : index
    %21 = vector.load %arg4[%c1_13, %c0_14, %c0_15] : memref<6x1x128xf32, #tpu.memory_space<vmem>>, vector<1x1x128xf32>
    %22 = vector.shape_cast %21 : vector<1x1x128xf32> to vector<1x128xf32>
    %23 = vector.broadcast %22 : vector<1x128xf32> to vector<8x128xf32>
    %24 = arith.addf %20, %23 : vector<8x128xf32>
    %cst_16 = arith.constant 0.000000e+00 : f32
    %25 = vector.broadcast %cst_16 : f32 to vector<8x128xf32>
    %26 = arith.maximumf %24, %25 : vector<8x128xf32>
    %27 = arith.truncf %26 : vector<8x128xf32> to vector<8x128xbf16>
    %c1_17 = arith.constant 1 : index
    %c0_18 = arith.constant 0 : index
    %c0_19 = arith.constant 0 : index
    %28 = vector.load %arg3[%c1_17, %c0_18, %c0_19] : memref<3x128x128xbf16, #tpu.memory_space<vmem>>, vector<1x128x128xbf16>
    %29 = vector.shape_cast %28 : vector<1x128x128xbf16> to vector<128x128xbf16>
    %cst_20 = arith.constant dense<0.000000e+00> : vector<8x128xf32>
    %30 = tpu.matmul %27, %29, %cst_20 {dimension_numbers = #tpu.dot_dimension_numbers<[1], [0], [0], [1], [0, 0, 1, 1], [], []>} : vector<8x128xbf16>, vector<128x128xbf16>, vector<8x128xf32> -> vector<8x128xf32>
    %c2 = arith.constant 2 : index
    %c0_21 = arith.constant 0 : index
    %c0_22 = arith.constant 0 : index
    %31 = vector.load %arg4[%c2, %c0_21, %c0_22] : memref<6x1x128xf32, #tpu.memory_space<vmem>>, vector<1x1x128xf32>
    %32 = vector.shape_cast %31 : vector<1x1x128xf32> to vector<1x128xf32>
    %33 = vector.broadcast %32 : vector<1x128xf32> to vector<8x128xf32>
    %34 = arith.addf %30, %33 : vector<8x128xf32>
    %cst_23 = arith.constant 0.000000e+00 : f32
    %35 = vector.broadcast %cst_23 : f32 to vector<8x128xf32>
    %36 = arith.maximumf %34, %35 : vector<8x128xf32>
    %37 = arith.truncf %36 : vector<8x128xf32> to vector<8x128xbf16>
    %c2_24 = arith.constant 2 : index
    %c0_25 = arith.constant 0 : index
    %c0_26 = arith.constant 0 : index
    %38 = vector.load %arg3[%c2_24, %c0_25, %c0_26] : memref<3x128x128xbf16, #tpu.memory_space<vmem>>, vector<1x128x128xbf16>
    %39 = vector.shape_cast %38 : vector<1x128x128xbf16> to vector<128x128xbf16>
    %cst_27 = arith.constant dense<0.000000e+00> : vector<8x128xf32>
    %40 = tpu.matmul %37, %39, %cst_27 {dimension_numbers = #tpu.dot_dimension_numbers<[1], [0], [0], [1], [0, 0, 1, 1], [], []>} : vector<8x128xbf16>, vector<128x128xbf16>, vector<8x128xf32> -> vector<8x128xf32>
    %c3 = arith.constant 3 : index
    %c0_28 = arith.constant 0 : index
    %c0_29 = arith.constant 0 : index
    %41 = vector.load %arg4[%c3, %c0_28, %c0_29] : memref<6x1x128xf32, #tpu.memory_space<vmem>>, vector<1x1x128xf32>
    %42 = vector.shape_cast %41 : vector<1x1x128xf32> to vector<1x128xf32>
    %43 = vector.broadcast %42 : vector<1x128xf32> to vector<8x128xf32>
    %44 = arith.addf %40, %43 : vector<8x128xf32>
    %cst_30 = arith.constant 0.000000e+00 : f32
    %45 = vector.broadcast %cst_30 : f32 to vector<8x128xf32>
    %46 = arith.maximumf %44, %45 : vector<8x128xf32>
    %c4 = arith.constant 4 : index
    %c0_31 = arith.constant 0 : index
    %c0_32 = arith.constant 0 : index
    %47 = vector.load %arg4[%c4, %c0_31, %c0_32] : memref<6x1x128xf32, #tpu.memory_space<vmem>>, vector<1x1x128xf32>
    %48 = vector.shape_cast %47 : vector<1x1x128xf32> to vector<1x128xf32>
    %49 = vector.broadcast %48 : vector<1x128xf32> to vector<8x128xf32>
    %50 = arith.mulf %46, %49 : vector<8x128xf32>
    %c5 = arith.constant 5 : index
    %c0_33 = arith.constant 0 : index
    %c0_34 = arith.constant 0 : index
    %51 = vector.load %arg4[%c5, %c0_33, %c0_34] : memref<6x1x128xf32, #tpu.memory_space<vmem>>, vector<1x1x128xf32>
    %52 = vector.shape_cast %51 : vector<1x1x128xf32> to vector<1x128xf32>
    %53 = vector.broadcast %52 : vector<1x128xf32> to vector<8x128xf32>
    %54 = arith.addf %50, %53 : vector<8x128xf32>
    %cst_35 = arith.constant dense<0.000000e+00> : vector<8xf32>
    %55 = vector.multi_reduction <add>, %54, %cst_35 [1] : vector<8x128xf32> to vector<8xf32>
    %56 = vector.shape_cast %55 : vector<8xf32> to vector<8x1xf32>
    %cst_36 = arith.constant 0.000000e+00 : f32
    %57 = vector.broadcast %cst_36 : f32 to vector<8x1xf32>
    %58 = arith.subf %57, %56 : vector<8x1xf32>
    %59 = math.exp %58 : vector<8x1xf32>
    %cst_37 = arith.constant 1.000000e+00 : f32
    %60 = vector.broadcast %cst_37 : f32 to vector<8x1xf32>
    %61 = arith.addf %60, %59 : vector<8x1xf32>
    %cst_38 = arith.constant 1.000000e+00 : f32
    %62 = vector.broadcast %cst_38 : f32 to vector<8x1xf32>
    %63 = arith.divf %62, %61 : vector<8x1xf32>
    %64 = tpu.iota {dimensions = array<i32: 1>} : vector<8x2xi32>
    %c0_i32 = arith.constant 0 : i32
    %65 = vector.broadcast %c0_i32 : i32 to vector<8x2xi32>
    %66 = arith.cmpi eq, %64, %65 : vector<8x2xi32>
    %cst_39 = arith.constant 1.000000e+00 : f32
    %67 = vector.broadcast %cst_39 : f32 to vector<8x1xf32>
    %68 = arith.subf %67, %63 : vector<8x1xf32>
    %69 = vector.shape_cast %68 : vector<8x1xf32> to vector<8x1xf32>
    %70 = vector.broadcast %69 : vector<8x1xf32> to vector<8x2xf32>
    %71 = vector.shape_cast %63 : vector<8x1xf32> to vector<8x1xf32>
    %72 = vector.broadcast %71 : vector<8x1xf32> to vector<8x2xf32>
    %73 = arith.select %66, %70, %72 : vector<8x2xi1>, vector<8x2xf32>
    %c0_40 = arith.constant 0 : index
    %c0_41 = arith.constant 0 : index
    %74 = vector.load %arg5[%c0_40, %c0_41] : memref<8x2xf32, #tpu.memory_space<vmem>>, vector<8x2xf32>
    tpu.vector_store %arg5[%c0_40, %c0_41], %73 {strides = array<i32>} : memref<8x2xf32, #tpu.memory_space<vmem>>, vector<8x2xf32>,
    return
  }
  func.func @transform_0(%arg0: i32) -> (i32, i32) {
    %c0_i32 = arith.constant 0 : i32
    %c0_i32_0 = arith.constant 0 : i32
    return %arg0, %c0_i32 : i32, i32
  }
  func.func @transform_1(%arg0: i32) -> (i32, i32) {
    %c0_i32 = arith.constant 0 : i32
    %c0_i32_0 = arith.constant 0 : i32
    %c0_i32_1 = arith.constant 0 : i32
    return %c0_i32, %c0_i32_0 : i32, i32
  }
  func.func @transform_2(%arg0: i32) -> (i32, i32, i32) {
    %c0_i32 = arith.constant 0 : i32
    %c0_i32_0 = arith.constant 0 : i32
    %c0_i32_1 = arith.constant 0 : i32
    %c0_i32_2 = arith.constant 0 : i32
    return %c0_i32, %c0_i32_0, %c0_i32_1 : i32, i32, i32
  }
  func.func @transform_3(%arg0: i32) -> (i32, i32, i32) {
    %c0_i32 = arith.constant 0 : i32
    %c0_i32_0 = arith.constant 0 : i32
    %c0_i32_1 = arith.constant 0 : i32
    %c0_i32_2 = arith.constant 0 : i32
    return %c0_i32, %c0_i32_0, %c0_i32_1 : i32, i32, i32
  }
  func.func @transform_4(%arg0: i32) -> (i32, i32) {
    %c0_i32 = arith.constant 0 : i32
    %c0_i32_0 = arith.constant 0 : i32
    return %arg0, %c0_i32 : i32, i32
  }
}

</mosaic_0001>

<bundles_post_ra>
// kernel: tpu_custom_call.1
= control target key start
LH: loop header
LB: loop body
LE: loop exit
PB: predicated region body
PF: predicated region fallthrough
CT: control target
= control target key end

     0   :  { %9 = vsyncpa [#allocation3], 0  ;;  %s629_s15 = smov [#allocation2]   ;;  %s724_s0 = inlined_call_operand.vmem [shape: f32[8,2], index: 0, kind: input, shape index: {}]   ;;  %s725_s1 = inlined_call_operand.vmem [shape: f32[2,128], index: 1, kind: input, shape index: {}]   ;;  %s726_s2 = inlined_call_operand.hbm [shape: bf16[3,128,128], index: 2, kind: input, shape index: {}]   ;;  %s727_s3 = inlined_call_operand.vmem [shape: f32[6,1,128], index: 3, kind: input, shape index: {}]   ;;  %s728_s4 = inlined_call_operand.vmem [shape: f32[8,2], index: 4, kind: output, shape index: {}]  }
   0x1   :  { %s19_s16 = sshll.u32 %s629_s15, 4  ;;  %s20_s16 = int_to_ptr.vmem [resolvable:$true] %s19_s16 }
   0x2   :  { %s615_s17 = scalar_lea.vmem %s20_s16, 3072  ;;  %p620_p1 = scmp.lt.s32.totalorder %s20_s16, %s20_s16 }
   0x3   :  { %p616_p0 = scmp.ne.s32.totalorder %s20_s16, %s615_s17  ;;  %p621_p2 = scmp.lt.s32.totalorder %s615_s17, %s615_s17 }
   0x5   :  { %p622_p3 = por %p621_p2, %p620_p1 }
   0x7   :  { %p623_p4 = pnand %p622_p3, %p616_p0 }
   0x9   :  { %626 = shalt.err (!%p623_p4)
}
   0xa   :  { %s630_s18 = smov 64   ;;  %s631_s19 = smov 4  }
   0xb   :  { %25 = dma.hbm_to_vmem [thread:$0]  %s726_s2, 3072, %s20_s16, [#allocation3], %s630_s18, %s630_s18, %s631_s19  }
   0xc   :  { %627 = dma.done.wait [#allocation3], 3072  }
   0xd   :  { %628 = vsyncadd [#allocation3], 4294964224  ;;  %v632_v0 = vmov 0   ;;  %v633_v1 = vmov 0.0   ;;  %v32_v2 = vld [vmem:[%s724_s0] sm:$0xff]  ;;  %v579_v3 = vld [vmem:[#allocation2 + $0x38] sm:$0xff]  }
   0xe   :  { %577 = vset.pattern.permute.xlu0 %v632_v0  ;;  %510 = vmatprep.subr.bf16.mxu0 %v633_v1  ;;  %v580_v4 = vld [vmem:[#allocation2 + $0x30] sm:$0xff]   ;;  %v634_v5 = vmov 1   ;;  %v581_v6 = vld [vmem:[#allocation2 + $0x28] sm:$0xff]   ;;  %vm635_vm0 = vmmov 0   ;;  %v582_v7 = vld [vmem:[#allocation2 + $0x20] sm:$0xff]   ;;  %vm439_vm2 = vcmask 15360  }
   0xf   :  { %530 = vmatprep.subr.bf16.mxu1 %v633_v1  ;;  %36 = vperm.xlu0 %577, %v32_v2   ;;  %v587_v8 = vld [vmem:[#allocation2 + $0x78] sm:$0xff]   ;;  %v588_v9 = vld [vmem:[#allocation2 + $0x70] sm:$0xff]   ;;  %v589_v11 = vld [vmem:[#allocation2 + $0x68] sm:$0xff]  }
  0x10   :  { %511 = vmatpush3.bf16.msra.mxu0 %v579_v3  ;;  %526 = vmatprep.mubr.msk.bf16.mxu0 %vm635_vm0, %v633_v1  ;;  %v583_v10 = vld [vmem:[#allocation2 + $0x18] sm:$0xff]   ;;  %v584_v12 = vld [vmem:[#allocation2 + $0x10] sm:$0xff]   ;;  %v590_v13 = vld [vmem:[#allocation2 + $0x60] sm:$0xff]  }
  0x11   :  { %512 = vmatprep.subr.bf16.mxu0 %v633_v1  ;;  %546 = vmatprep.mubr.msk.bf16.mxu1 %vm635_vm0, %v633_v1  ;;  %v585_v14 = vld [vmem:[#allocation2 + $0x8] sm:$0xff]   ;;  %v591_v15 = vld [vmem:[#allocation2 + $0x58] sm:$0xff]   ;;  %v586_v16 = vld [vmem:[#allocation2] sm:$0xff]  }
  0x12   :  { %531 = vmatpush3.bf16.msra.mxu1 %v587_v8  ;;  %v592_v17 = vld [vmem:[#allocation2 + $0x50] sm:$0xff]   ;;  %v446_v19 = vld [vmem:[%s725_s1] ss:$0 sm:$0xff]  ;;  %v447_v20 = vld [vmem:[%s725_s1 + $0x1] ss:$0 sm:$0xff] }
  0x13   :  { %578 = vset.pattern.permute.xlu0 %v634_v5  ;;  %532 = vmatprep.subr.bf16.mxu1 %v633_v1  ;;  %v448_v24 = vld [vmem:[%s727_s3] ss:$0 sm:$0xff]  ;;  %v593_v29 = vld [vmem:[#allocation2 + $0x48] sm:$0xff]   ;;  %v595_v31 = vld [vmem:[#allocation2 + $0xb8] sm:$0xff]  }
  0x14   :  { %46 = vperm.xlu0 %578, %v32_v2   ;;  %513 = vmatpush3.bf16.msra.mxu0 %v580_v4  ;;  %v594_v30 = vld [vmem:[#allocation2 + $0x40] sm:$0xff]   ;;  %v596_v32 = vld [vmem:[#allocation2 + $0xb0] sm:$0xff]   ;;  %v597_v33 = vld [vmem:[#allocation2 + $0xa8] sm:$0xff]  }
  0x15   :  { %514 = vmatprep.subr.bf16.mxu0 %v633_v1  ;;  %v598_v34 = vld [vmem:[#allocation2 + $0xa0] sm:$0xff]   ;;  %v599_v35 = vld [vmem:[#allocation2 + $0x98] sm:$0xff]   ;;  %v600_v36 = vld [vmem:[#allocation2 + $0x90] sm:$0xff]  }
  0x16   :  { %533 = vmatpush3.bf16.msra.mxu1 %v588_v9  ;;  %v450_v37 = vld [vmem:[%s727_s3 + $0x1] ss:$0 sm:$0xff]  ;;  %v601_v45 = vld [vmem:[#allocation2 + $0x88] sm:$0xff]   ;;  %v460_v47 = vld [vmem:[%s727_s3 + $0x2] ss:$0 sm:$0xff] }
  0x17   :  { %534 = vmatprep.subr.bf16.mxu1 %v633_v1  ;;  %v602_v46 = vld [vmem:[#allocation2 + $0x80] sm:$0xff]  }
  0x18   :  { %515 = vmatpush3.bf16.msra.mxu0 %v581_v6  ;;  %v470_v55 = vld [vmem:[%s727_s3 + $0x3] ss:$0 sm:$0xff]  ;;  %v480_v59 = vld [vmem:[%s727_s3 + $0x4] ss:$0 sm:$0xff]  ;;  %v482_v62 = vld [vmem:[%s727_s3 + $0x5] ss:$0 sm:$0xff] }
  0x19   :  { %516 = vmatprep.subr.bf16.mxu0 %v633_v1 }
  0x1a   :  { %535 = vmatpush3.bf16.msra.mxu1 %v589_v11 }
  0x1b   :  { %536 = vmatprep.subr.bf16.mxu1 %v633_v1 }
  0x1c   :  { %517 = vmatpush3.bf16.msra.mxu0 %v582_v7  ;;  %v434_v7 = vlaneseq }
  0x1d   :  { %518 = vmatprep.subr.bf16.mxu0 %v633_v1 }
  0x1e   :  { %537 = vmatpush3.bf16.msra.mxu1 %v590_v13  ;;  %v435_v8 = vand.u32 127, %v434_v7 }
  0x1f   :  { %538 = vmatprep.subr.bf16.mxu1 %v633_v1 }
  0x20   :  { %519 = vmatpush3.bf16.msra.mxu0 %v583_v10  ;;  %vm436_vm1 = vcmp.eq.s32.totalorder %v435_v8, 0 }
  0x21   :  { %520 = vmatprep.subr.bf16.mxu0 %v633_v1 }
  0x22   :  { %539 = vmatpush3.bf16.msra.mxu1 %v591_v15 }
  0x23   :  { %540 = vmatprep.subr.bf16.mxu1 %v633_v1 }
  0x24   :  { %521 = vmatpush3.bf16.msra.mxu0 %v584_v12 }
  0x25   :  { %522 = vmatprep.subr.bf16.mxu0 %v633_v1 }
  0x26   :  { %541 = vmatpush3.bf16.msra.mxu1 %v592_v17 }
  0x27   :  { %542 = vmatprep.subr.bf16.mxu1 %v633_v1 }
  0x28   :  { %523 = vmatpush3.bf16.msra.mxu0 %v585_v14 }
  0x29   :  { %524 = vmatprep.subr.bf16.mxu0 %v633_v1 }
  0x2a   :  { %543 = vmatpush3.bf16.msra.mxu1 %v593_v29 }
  0x2b   :  { %544 = vmatprep.subr.bf16.mxu1 %v633_v1 }
  0x2c   :  { %525 = vmatpush3.bf16.msra.mxu0 %v586_v16 }
  0x2d   :  { %550 = vmatprep.subr.bf16.mxu0 %v633_v1 }
  0x2e   :  { %545 = vmatpush3.bf16.msra.mxu1 %v594_v30 }
  0x8a   :  { %v37_v18 = vpop.permute.xlu0 %36 }
  0x8b   :  { %v43_v22 = vmul.f32 %v446_v19, %v37_v18 }
  0x8f   :  { %v47_v21 = vpop.permute.xlu0 %46 }
  0x90   :  { %v53_v23 = vmul.f32 %v447_v20, %v47_v21 }
  0x92   :  { %v54_v25 = vadd.f32 %v53_v23, %v43_v22 }
  0x94   :  { %v62_v26 = vadd.f32 %v448_v24, %v54_v25 }
  0x96   :  { %v63_v27 = vmax.f32 %v62_v26, 0.0 }
  0x98   :  { %v64_v28 = vpack.c.bf16 %v63_v27, %v63_v27 }
  0x9a   :  { %527 = vmatmul.mubr.bf16.vlgmr.msra.gmra.mxu0 %v64_v28 }
  0x9b   :  { %566 = vmatprep.mubr.msk.bf16.mxu0 %vm635_vm0, %v633_v1  ;;  %551 = vmatpush3.bf16.msra.mxu0 %v595_v31 }
  0x9c   :  { %552 = vmatprep.subr.bf16.mxu0 %v633_v1 }
  0x9f   :  { %553 = vmatpush3.bf16.msra.mxu0 %v596_v32 }
  0xa0   :  { %554 = vmatprep.subr.bf16.mxu0 %v633_v1 }
  0xa3   :  { %555 = vmatpush3.bf16.msra.mxu0 %v597_v33 }
  0xa4   :  { %556 = vmatprep.subr.bf16.mxu0 %v633_v1 }
  0xa7   :  { %557 = vmatpush3.bf16.msra.mxu0 %v598_v34 }
  0xa8   :  { %558 = vmatprep.subr.bf16.mxu0 %v633_v1 }
  0xab   :  { %559 = vmatpush3.bf16.msra.mxu0 %v599_v35 }
  0xac   :  { %560 = vmatprep.subr.bf16.mxu0 %v633_v1 }
  0xaf   :  { %561 = vmatpush3.bf16.msra.mxu0 %v600_v36 }
  0xb0   :  { %562 = vmatprep.subr.bf16.mxu0 %v633_v1 }
  0xb3   :  { %563 = vmatpush3.bf16.msra.mxu0 %v601_v45 }
  0xb4   :  { %564 = vmatprep.subr.bf16.mxu0 %v633_v1 }
  0xb7   :  { %565 = vmatpush3.bf16.msra.mxu0 %v602_v46 }
 0x15a   :  { %v171_v38 = vpop.f32.mrf.mxu0 }
 0x15b   :  { %v172_v39 = vadd.f32 %v450_v37, %v171_v38 }
 0x15c   :  { %v528_v40 = vpop.f32.mrf.mxu0 }
 0x15d   :  { %v177_v41 = vmax.f32 %v172_v39, 0.0 }
 0x15e   :  { %v174_v42 = vpop.f32.mrf.mxu0 }
 0x15f   :  { %v178_v43 = vpack.c.bf16 %v177_v41, %v177_v41 }
 0x160   :  { %v529_v44 = vpop.f32.mrf.mxu0 }
 0x161   :  { %547 = vmatmul.mubr.bf16.vlgmr.msra.gmra.mxu1 %v178_v43 }
 0x221   :  { %v286_v48 = vpop.f32.mrf.mxu1 }
 0x222   :  { %v287_v49 = vadd.f32 %v460_v47, %v286_v48 }
 0x223   :  { %v548_v50 = vpop.f32.mrf.mxu1 }
 0x224   :  { %v292_v51 = vmax.f32 %v287_v49, 0.0 }
 0x225   :  { %v289_v52 = vpop.f32.mrf.mxu1 }
 0x226   :  { %v293_v53 = vpack.c.bf16 %v292_v51, %v292_v51 }
 0x227   :  { %v549_v54 = vpop.f32.mrf.mxu1 }
 0x228   :  { %567 = vmatmul.mubr.bf16.vlgmr.msra.gmra.mxu0 %v293_v53 }
 0x2e8   :  { %v401_v56 = vpop.f32.mrf.mxu0 }
 0x2e9   :  { %v402_v57 = vadd.f32 %v470_v55, %v401_v56 }
 0x2ea   :  { %v568_v58 = vpop.f32.mrf.mxu0 }
 0x2eb   :  { %v407_v60 = vmax.f32 %v402_v57, 0.0 }
 0x2ec   :  { %v404_v61 = vpop.f32.mrf.mxu0 }
 0x2ed   :  { %v416_v63 = vmul.f32 %v480_v59, %v407_v60 }
 0x2ee   :  { %v569_v0 = vpop.f32.mrf.mxu0 }
 0x2ef   :  { %v425_v1 = vadd.f32 %v482_v62, %v416_v63 }
 0x2f1   :  { %426 = vadd.xlane.f32.xlu1 %v425_v1 }
 0x37a   :  { %v427_v2 = vpop.xlane.xlu1 %426 }
 0x37b   :  { %v428_v3 = vsub.f32 0.0, %v427_v2 }
 0x37d   :  { %v429_v4 = vmul.f32 1.442695, %v428_v3 }
 0x37f   :  { %603 = vpow2.f32 %v429_v4 }
 0x38c   :  { %v604_v5 = vpop.eup %603 }
 0x38d   :  { %v431_v6 = vadd.f32 1.0, %v604_v5 }
 0x38f   :  { %605 = vrcp.f32 %v431_v6 }
 0x39c   :  { %v606_v9 = vpop.eup %605 }
 0x39d   :  { %v437_v10 = vsub.f32 1.0, %v606_v9 }
 0x39f   :  { %v438_v11 = vsel %vm436_vm1, %v437_v10, %v606_v9 }
 0x3a0   :  { %440 = vst.msk [vmem:[%s728_s4] sm:$0xff] %vm439_vm2, %v438_v11 }
 0x3a1   :  { %445 = vsyncpa [#allocation3], 1 }

</bundles_post_ra>
